<compile_context>
chip_gen: v7x
topology: tpu7x:2x2x1
jax: 0.10.0
libtpu: 0.0.40
codegen_flags: <defaults>
</compile_context>

<pallas_src>
import functools

import jax
import jax.numpy as jnp
from jax.experimental import pallas as pl
from jax.experimental.pallas import tpu as pltpu


# ---------------------------------------------------------------------------
# helpers
# ---------------------------------------------------------------------------
def _round_up(x, m):
    return ((x + m - 1) // m) * m


def _pick_tile(n):
    # 256 keeps the MXU K-dim friendly on v6e/v7x; small graphs use one block.
    return 256 if n >= 256 else _round_up(n, 32)


# ---------------------------------------------------------------------------
# Kernel 1: fused projection   out = x @ [W | W@a_dst | W@a_src]
# ---------------------------------------------------------------------------
def _proj_kernel(x_ref, w_ref, h_ref, alphas_ref, *, h_cols):
    acc = jnp.dot(x_ref[...], w_ref[...], preferred_element_type=jnp.float32)
    h_ref[...] = acc[:, :h_cols].astype(h_ref.dtype)       # [tile, Hp] bf16
    alphas_ref[...] = acc[:, h_cols:]                       # [tile, 128] f32 (cols 0,1 used)


def _project(x_bf16, w_fused_bf16, h_cols, tile):
    n_pad, d_pad = x_bf16.shape
    fused_cols = w_fused_bf16.shape[1]
    grid = (n_pad // tile,)
    h, alphas = pl.pallas_call(
        functools.partial(_proj_kernel, h_cols=h_cols),
        out_shape=(
            jax.ShapeDtypeStruct((n_pad, h_cols), jnp.bfloat16),
            jax.ShapeDtypeStruct((n_pad, 128), jnp.float32),
        ),
        grid_spec=pltpu.PrefetchScalarGridSpec(
            num_scalar_prefetch=0,
            grid=grid,
            in_specs=[
                pl.BlockSpec((tile, d_pad), lambda i: (i, 0)),
                pl.BlockSpec((d_pad, fused_cols), lambda i: (0, 0)),
            ],
            out_specs=[
                pl.BlockSpec((tile, h_cols), lambda i: (i, 0)),
                pl.BlockSpec((tile, 128), lambda i: (i, 0)),
            ],
        ),
        compiler_params=pltpu.CompilerParams(dimension_semantics=("parallel",)),
    )(x_bf16, w_fused_bf16)
    alpha_dst = alphas[:, 0:1]                     # [N_pad, 1]
    alpha_src_row = alphas[:, 1].reshape(1, n_pad)  # [1, N_pad] (one-time reshape)
    return h, alpha_dst, alpha_src_row


# ---------------------------------------------------------------------------
# Kernel 2: tiled masked-softmax aggregation (flash-style online softmax)
# ---------------------------------------------------------------------------
def _attn_kernel(adj_ref, adst_ref, asrc_ref, h_ref, b_ref, out_ref,
                 m_sc, l_sc, acc_sc, *, activation):
    j = pl.program_id(1)

    @pl.when(j == 0)
    def _():
        m_sc[...] = jnp.full_like(m_sc, -1e30)
        l_sc[...] = jnp.zeros_like(l_sc)
        acc_sc[...] = jnp.zeros_like(acc_sc)

    mask = adj_ref[...] > 0                                  # int8 tile -> bool
    e = adst_ref[...] + asrc_ref[...]                        # [tm,1]+[1,tn] -> [tm,tn]
    e = jnp.maximum(e, 0.2 * e)                              # LeakyReLU(0.2) (no select)
    e = jnp.where(mask, e, -1e30)

    m_prev = m_sc[...]
    m_new = jnp.maximum(m_prev, jnp.max(e, axis=-1, keepdims=True))
    # explicit mask on p: robust for source blocks with no incoming edges
    p = jnp.where(mask, jnp.exp(e - m_new), 0.0)
    scale = jnp.exp(m_prev - m_new)

    l_sc[...] = scale * l_sc[...] + jnp.sum(p, axis=-1, keepdims=True)
    acc_sc[...] = scale * acc_sc[...] + jnp.dot(
        p.astype(jnp.bfloat16), h_ref[...], preferred_element_type=jnp.float32)
    m_sc[...] = m_new

    @pl.when(j == pl.num_programs(1) - 1)
    def _():
        denom = jnp.maximum(l_sc[...], 1e-20)                # guard padded/isolated rows
        out = acc_sc[...] * pl.reciprocal(denom, approx=True) + b_ref[...]
        if activation == "relu":
            out = jnp.maximum(out, 0.0)
        else:
            out = jnp.tanh(out)
        out_ref[...] = out.astype(out_ref.dtype)


def _attend(adj, alpha_dst, alpha_src_row, h, bias, tile, *, activation, out_dtype):
    n_pad = adj.shape[0]
    h_cols = h.shape[1]
    grid = (n_pad // tile, n_pad // tile)
    return pl.pallas_call(
        functools.partial(_attn_kernel, activation=activation),
        out_shape=jax.ShapeDtypeStruct((n_pad, h_cols), out_dtype),
        grid_spec=pltpu.PrefetchScalarGridSpec(
            num_scalar_prefetch=0,
            grid=grid,
            in_specs=[
                pl.BlockSpec((tile, tile), lambda i, j: (i, j)),   # adj (int8, streamed)
                pl.BlockSpec((tile, 1), lambda i, j: (i, 0)),      # alpha_dst col
                pl.BlockSpec((1, tile), lambda i, j: (0, j)),      # alpha_src row
                pl.BlockSpec((tile, h_cols), lambda i, j: (j, 0)),  # h source block (bf16)
                pl.BlockSpec((1, h_cols), lambda i, j: (0, 0)),    # bias
            ],
            out_specs=pl.BlockSpec((tile, h_cols), lambda i, j: (i, 0)),
            scratch_shapes=[
                pltpu.VMEM((tile, 1), jnp.float32),    # running max
                pltpu.VMEM((tile, 1), jnp.float32),    # running sum
                pltpu.VMEM((tile, h_cols), jnp.float32),  # accumulator
            ],
        ),
        compiler_params=pltpu.CompilerParams(
            dimension_semantics=("parallel", "arbitrary"),
            vmem_limit_bytes=32 * 1024 * 1024,
        ),
    )(adj, alpha_dst, alpha_src_row, h, bias)


# ---------------------------------------------------------------------------
# Wrapper: parameter fusion / padding (plain-JAX glue) + two GATConv layers
# ---------------------------------------------------------------------------
def _fuse_layer_params(w, a_src, a_dst, din_pad, dout_pad):
    """Build bf16 [din_pad, dout_pad + 128] fused weight: [W | col0=W@a_dst, col1=W@a_src]."""
    din, dout = w.shape
    w_pad = jnp.zeros((din_pad, dout_pad), jnp.float32).at[:din, :dout].set(w)
    alpha_blk = jnp.zeros((din_pad, 128), jnp.float32)
    alpha_blk = alpha_blk.at[:din, 0:1].set(w @ a_dst)
    alpha_blk = alpha_blk.at[:din, 1:2].set(w @ a_src)
    return jnp.concatenate([w_pad, alpha_blk], axis=1).astype(jnp.bfloat16)


def _pad_bias(b, dout_pad):
    dout = b.shape[-1]
    return jnp.zeros((1, dout_pad), jnp.float32).at[:, :dout].set(b.reshape(1, dout))


def gat_forward(x, edge_index, params):
    """x: [N, input_dim] f32, edge_index: [2, E] int32 (row0=src, row1=dst)."""
    n, din = x.shape
    hidden = params["w1"].shape[1]
    out_dim = params["w2"].shape[1]

    tile = _pick_tile(n)
    n_pad = _round_up(n, tile)
    din_p = _round_up(din, 128)
    hid_p = _round_up(hidden, 128)
    out_p = _round_up(out_dim, 128)

    # Dense int8 adjacency (target x source) with self loops, padded to n_pad.
    # TODO(synk): edge_index scatter has no clean Pallas equivalent; built with XLA scatter.
    src, dst = edge_index[0], edge_index[1]
    adj = jnp.zeros((n_pad, n_pad), jnp.int8).at[dst, src].set(1)
    idx = jnp.arange(n)
    adj = adj.at[idx, idx].set(1)  # add_self_loops=True

    x_pad = jnp.zeros((n_pad, din_p), jnp.float32).at[:n, :din].set(x).astype(jnp.bfloat16)

    wf1 = _fuse_layer_params(params["w1"], params["att_src1"], params["att_dst1"], din_p, hid_p)
    b1 = _pad_bias(params["b1"], hid_p)
    wf2 = _fuse_layer_params(params["w2"], params["att_src2"], params["att_dst2"], hid_p, out_p)
    b2 = _pad_bias(params["b2"], out_p)

    # layer 1: project -> attend -> relu
    h1, adst1, asrc1 = _project(x_pad, wf1, hid_p, tile)
    h1a = _attend(adj, adst1, asrc1, h1, b1, tile, activation="relu", out_dtype=jnp.bfloat16)

    # layer 2: project -> attend -> tanh
    h2, adst2, asrc2 = _project(h1a, wf2, out_p, tile)
    out = _attend(adj, adst2, asrc2, h2, b2, tile, activation="tanh", out_dtype=jnp.float32)

    return out[:n, :out_dim]


# ---------------------------------------------------------------------------
# Params + pure-JAX reference (f32) for a sanity check
# ---------------------------------------------------------------------------
def init_params(key, input_dim, hidden_dim, output_dim):
    ks = jax.random.split(key, 6)

    def glorot(k, shape):
        fan_in, fan_out = shape[0], shape[-1]
        lim = (6.0 / (fan_in + fan_out)) ** 0.5
        return jax.random.uniform(k, shape, jnp.float32, -lim, lim)

    return {
        "w1": glorot(ks[0], (input_dim, hidden_dim)),
        "att_src1": glorot(ks[1], (hidden_dim, 1)),
        "att_dst1": glorot(ks[2], (hidden_dim, 1)),
        "b1": jnp.zeros((1, hidden_dim), jnp.float32),
        "w2": glorot(ks[3], (hidden_dim, output_dim)),
        "att_src2": glorot(ks[4], (output_dim, 1)),
        "att_dst2": glorot(ks[5], (output_dim, 1)),
        "b2": jnp.zeros((1, output_dim), jnp.float32),
    }


def gat_reference(x, edge_index, params):
    n = x.shape[0]
    src, dst = edge_index[0], edge_index[1]
    adj = jnp.zeros((n, n), jnp.float32).at[dst, src].set(1.0)
    adj = adj.at[jnp.arange(n), jnp.arange(n)].set(1.0)

    def conv(h_in, w, a_src, a_dst, b):
        h = h_in @ w
        e = h @ a_dst + (h @ a_src).T
        e = jnp.where(e > 0, e, 0.2 * e)
        e = jnp.where(adj > 0, e, -jnp.inf)
        p = jax.nn.softmax(e, axis=-1)
        return p @ h + b

    h1 = jax.nn.relu(conv(x, params["w1"], params["att_src1"], params["att_dst1"], params["b1"]))
    return jnp.tanh(conv(h1, params["w2"], params["att_src2"], params["att_dst2"], params["b2"]))


# ---------------------------------------------------------------------------
if __name__ == "__main__":
    N, input_dim, hidden_dim, output_dim = 16, 8, 32, 8

    key = jax.random.PRNGKey(0)
    kx, kp = jax.random.split(key)
    x = jax.random.normal(kx, (N, input_dim), jnp.float32)

    # Deterministic bidirectional ring graph: 2*N edges, no duplicate/self edges.
    fwd_src = jnp.arange(N, dtype=jnp.int32)
    fwd_dst = (fwd_src + 1) % N
    edge_index = jnp.stack(
        [jnp.concatenate([fwd_src, fwd_dst]), jnp.concatenate([fwd_dst, fwd_src])],
        axis=0,
    )

    params = init_params(kp, input_dim, hidden_dim, output_dim)

    out = gat_forward(x, edge_index, params)
    jax.block_until_ready(out)
    assert out.shape == (N, output_dim)
    assert bool(jnp.all(jnp.isfinite(out)))

    # loose sanity check vs f32 reference (kernel matmuls run in bf16)
    ref = gat_reference(x, edge_index, params)
    assert float(jnp.max(jnp.abs(out - ref))) < 0.2

    print("KERNEL_OK")
</pallas_src>

<mosaic_0001>
module attributes {stable_mosaic.version = 11 : i64} {
  func.func @_proj_kernel(%arg0: i32, %arg1: memref<32x128xbf16, #tpu.memory_space<vmem>>, %arg2: memref<128x256xbf16, #tpu.memory_space<vmem>>, %arg3: memref<32x128xbf16, #tpu.memory_space<vmem>>, %arg4: memref<32x128xf32, #tpu.memory_space<vmem>>) attributes {dimension_semantics = [#tpu.dimension_semantics<parallel>], iteration_bounds = array<i64: 1>, scalar_prefetch = 0 : i64, scratch_operands = 0 : i64, tpu.core_type = #tpu.core_type<tc>, window_params = [{transform_indices = @transform_0, window_bounds = array<i64: 32, 128>}, {pipeline_mode = #tpu.pipeline_mode<synchronous>, transform_indices = @transform_1, window_bounds = array<i64: 128, 256>}, {transform_indices = @transform_2, window_bounds = array<i64: 32, 128>}, {transform_indices = @transform_3, window_bounds = array<i64: 32, 128>}]} {
    %c0 = arith.constant 0 : index
    %c0_0 = arith.constant 0 : index
    %0 = vector.load %arg1[%c0, %c0_0] : memref<32x128xbf16, #tpu.memory_space<vmem>>, vector<32x128xbf16>
    %c0_1 = arith.constant 0 : index
    %c0_2 = arith.constant 0 : index
    %1 = vector.load %arg2[%c0_1, %c0_2] : memref<128x256xbf16, #tpu.memory_space<vmem>>, vector<128x256xbf16>
    %cst = arith.constant dense<0.000000e+00> : vector<32x256xf32>
    %2 = tpu.matmul %0, %1, %cst {dimension_numbers = #tpu.dot_dimension_numbers<[1], [0], [0], [1], [0, 0, 1, 1], [], []>} : vector<32x128xbf16>, vector<128x256xbf16>, vector<32x256xf32> -> vector<32x256xf32>
    %3 = vector.extract_strided_slice %2 {offsets = [0, 0], sizes = [32, 128], strides = [1, 1]} : vector<32x256xf32> to vector<32x128xf32>
    %4 = arith.truncf %3 : vector<32x128xf32> to vector<32x128xbf16>
    %c0_3 = arith.constant 0 : index
    %c0_4 = arith.constant 0 : index
    %5 = vector.load %arg3[%c0_3, %c0_4] : memref<32x128xbf16, #tpu.memory_space<vmem>>, vector<32x128xbf16>
    tpu.vector_store %arg3[%c0_3, %c0_4], %4 {strides = array<i32>} : memref<32x128xbf16, #tpu.memory_space<vmem>>, vector<32x128xbf16>,
    %6 = vector.extract_strided_slice %2 {offsets = [0, 128], sizes = [32, 128], strides = [1, 1]} : vector<32x256xf32> to vector<32x128xf32>
    %c0_5 = arith.constant 0 : index
    %c0_6 = arith.constant 0 : index
    %7 = vector.load %arg4[%c0_5, %c0_6] : memref<32x128xf32, #tpu.memory_space<vmem>>, vector<32x128xf32>
    tpu.vector_store %arg4[%c0_5, %c0_6], %6 {strides = array<i32>} : memref<32x128xf32, #tpu.memory_space<vmem>>, vector<32x128xf32>,
    return
  }
  func.func @transform_0(%arg0: i32) -> (i32, i32) {
    %c0_i32 = arith.constant 0 : i32
    %c0_i32_0 = arith.constant 0 : i32
    return %arg0, %c0_i32 : i32, i32
  }
  func.func @transform_1(%arg0: i32) -> (i32, i32) {
    %c0_i32 = arith.constant 0 : i32
    %c0_i32_0 = arith.constant 0 : i32
    %c0_i32_1 = arith.constant 0 : i32
    return %c0_i32, %c0_i32_0 : i32, i32
  }
  func.func @transform_2(%arg0: i32) -> (i32, i32) {
    %c0_i32 = arith.constant 0 : i32
    %c0_i32_0 = arith.constant 0 : i32
    return %arg0, %c0_i32 : i32, i32
  }
  func.func @transform_3(%arg0: i32) -> (i32, i32) {
    %c0_i32 = arith.constant 0 : i32
    %c0_i32_0 = arith.constant 0 : i32
    return %arg0, %c0_i32 : i32, i32
  }
}

</mosaic_0001>

<bundles_post_ra>
// kernel: tpu_custom_call.1
= control target key start
LH: loop header
LB: loop body
LE: loop exit
PB: predicated region body
PF: predicated region fallthrough
CT: control target
= control target key end

     0   :  { %9 = vsyncpa [#allocation3], 0  ;;  %s547_s0 = inlined_call_operand.hbm [shape: bf16[32,128], index: 0, kind: input, shape index: {}]   ;;  %s548_s1 = inlined_call_operand.hbm [shape: bf16[128,256], index: 1, kind: input, shape index: {}]   ;;  %s549_s2 = inlined_call_operand.hbm [shape: bf16[32,128], index: 2, kind: output, shape index: {0}]   ;;  %s550_s3 = inlined_call_operand.hbm [shape: f32[32,128], index: 3, kind: output, shape index: {1}]  }
   0x1   :  { %10 = vsyncpa [#allocation6], 0 }
   0x2   :  { %11 = vsyncpa [#allocation4], 0 }
   0x3   :  { %12 = vsyncpa [#allocation9], 0  ;;  %s451_s12 = smov [#allocation2]   ;;  %s355_s16 = scalar_lea.hbm %s547_s0, 256 }
   0x4   :  { %s18_s13 = sshll.u32 %s451_s12, 4  ;;  %p356_p0 = scmp.ne.s32.totalorder %s547_s0, %s355_s16  ;;  %s19_s13 = int_to_ptr.vmem [resolvable:$true] %s18_s13 }
   0x5   :  { %p359_p1 = scmp.lt.u32.totalorder %s355_s16, %s547_s0 }
   0x7   :  { %p361_p2 = pnand %p359_p1, %p356_p0 }
   0x9   :  { %364 = shalt.err (!%p361_p2)
}
   0xa   :  { %s365_s21 = scalar_lea.vmem %s19_s13, 256  ;;  %p370_p4 = scmp.lt.s32.totalorder %s19_s13, %s19_s13 }
   0xb   :  { %p366_p3 = scmp.ne.s32.totalorder %s19_s13, %s365_s21  ;;  %p371_p5 = scmp.lt.s32.totalorder %s365_s21, %s365_s21 }
   0xd   :  { %p372_p6 = por %p371_p5, %p370_p4 }
   0xf   :  { %p373_p7 = pnand %p372_p6, %p366_p3 }
  0x11   :  { %376 = shalt.err (!%p373_p7)
}
  0x12   :  { %s452_s22 = smov 64   ;;  %s453_s23 = smov 4  }
  0x13   :  { %24 = dma.hbm_to_vmem [thread:$0]  %s547_s0, 256, %s19_s13, [#allocation3], %s452_s22, %s452_s22, %s453_s23  }
  0x14   :  { %s454_s26 = smov [#allocation5]   ;;  %s377_s30 = scalar_lea.hbm %s548_s1, 2048 }
  0x15   :  { %s30_s27 = sshll.u32 %s454_s26, 4  ;;  %p378_p8 = scmp.ne.s32.totalorder %s548_s1, %s377_s30  ;;  %s31_s27 = int_to_ptr.vmem [resolvable:$true] %s30_s27 }
  0x16   :  { %p381_p9 = scmp.lt.u32.totalorder %s377_s30, %s548_s1 }
  0x18   :  { %p383_p10 = pnand %p381_p9, %p378_p8 }
  0x1a   :  { %386 = shalt.err (!%p383_p10)
}
  0x1b   :  { %s387_s8 = scalar_lea.vmem %s31_s27, 2048  ;;  %p392_p12 = scmp.lt.s32.totalorder %s31_s27, %s31_s27 }
  0x1c   :  { %p388_p11 = scmp.ne.s32.totalorder %s31_s27, %s387_s8  ;;  %p393_p13 = scmp.lt.s32.totalorder %s387_s8, %s387_s8 }
  0x1e   :  { %p394_p0 = por %p393_p13, %p392_p12 }
  0x20   :  { %p395_p1 = pnand %p394_p0, %p388_p11 }
  0x22   :  { %398 = shalt.err (!%p395_p1)
}
  0x23   :  { %s455_s0 = smov 128   ;;  %s456_s9 = smov 8  }
  0x24   :  { %36 = dma.hbm_to_vmem [thread:$0]  %s548_s1, 2048, %s31_s27, [#allocation6], %s455_s0, %s455_s0, %s456_s9  }
  0x25   :  { %443 = dma.done.wait [#allocation3], 256  }
  0x26   :  { %444 = vsyncadd [#allocation3], 4294967040 }
  0x27   :  { %445 = dma.done.wait [#allocation6], 2048  }
  0x28   :  { %446 = vsyncadd [#allocation6], 4294965248  ;;  %v457_v0 = vmov 0   ;;  %v329_v1 = vld [vmem:[#allocation5 + $0x4] ss:$8 sps:$4 sm:$0xff]   ;;  %v353_v17 = vld [vmem:[#allocation2] sm:$0xff]  }
  0x29   :  { %188 = vmatprep.mubr.bf16.mxu0 %v457_v0  ;;  %198 = vmatprep.mubr.bf16.mxu1 %v457_v0  ;;  %v331_v2 = vld [vmem:[#allocation5] ss:$8 sps:$4 sm:$0xff]   ;;  %v332_v3 = vld [vmem:[#allocation5 + $0x14] ss:$8 sps:$4 sm:$0xff]   ;;  %v334_v4 = vld [vmem:[#allocation5 + $0x10] ss:$8 sps:$4 sm:$0xff]  }
  0x2a   :  { %156 = vmatprep.subr.bf16.mxu0 %v329_v1  ;;  %304 = vmatprep.subr.bf16.mxu1 %v329_v1  ;;  %v335_v5 = vld [vmem:[#allocation5 + $0x24] ss:$8 sps:$4 sm:$0xff]   ;;  %v337_v6 = vld [vmem:[#allocation5 + $0x20] ss:$8 sps:$4 sm:$0xff]   ;;  %v338_v7 = vld [vmem:[#allocation5 + $0x34] ss:$8 sps:$4 sm:$0xff]  }
  0x2b   :  { %157 = vmatpush1.bf16.msra.mxu0 %v331_v2  ;;  %312 = vmatpush1.bf16.msra.mxu1 %v331_v2  ;;  %v340_v8 = vld [vmem:[#allocation5 + $0x30] ss:$8 sps:$4 sm:$0xff]   ;;  %v341_v9 = vld [vmem:[#allocation5 + $0x44] ss:$8 sps:$4 sm:$0xff]   ;;  %v343_v10 = vld [vmem:[#allocation5 + $0x40] ss:$8 sps:$4 sm:$0xff]  }
  0x2c   :  { %158 = vmatprep.subr.bf16.mxu0 %v332_v3  ;;  %305 = vmatprep.subr.bf16.mxu1 %v332_v3  ;;  %v344_v11 = vld [vmem:[#allocation5 + $0x54] ss:$8 sps:$4 sm:$0xff]   ;;  %v346_v12 = vld [vmem:[#allocation5 + $0x50] ss:$8 sps:$4 sm:$0xff]   ;;  %v347_v13 = vld [vmem:[#allocation5 + $0x64] ss:$8 sps:$4 sm:$0xff]  }
  0x2d   :  { %v349_v14 = vld [vmem:[#allocation5 + $0x60] ss:$8 sps:$4 sm:$0xff]   ;;  %v350_v15 = vld [vmem:[#allocation5 + $0x74] ss:$8 sps:$4 sm:$0xff]   ;;  %v352_v16 = vld [vmem:[#allocation5 + $0x70] ss:$8 sps:$4 sm:$0xff]  }
  0x2e   :  { %v354_v18 = vld [vmem:[#allocation2 + $0x8] sm:$0xff]   ;;  %s458_s1 = smov [#allocation8]   ;;  %s459_s13 = smov [#allocation7]  }
  0x2f   :  { %159 = vmatpush1.bf16.msra.mxu0 %v334_v4  ;;  %313 = vmatpush1.bf16.msra.mxu1 %v334_v4  ;;  %s250_s12 = sshll.u32 %s458_s1, 4  ;;  %s238_s14 = sshll.u32 %s459_s13, 4  ;;  %s251_s12 = int_to_ptr.vmem [resolvable:$true] %s250_s12  ;;  %s510_s14 = int_to_ptr.vmem [resolvable:$true] %s238_s14 }
  0x30   :  { %160 = vmatprep.subr.bf16.mxu0 %v335_v5  ;;  %306 = vmatprep.subr.bf16.mxu1 %v335_v5  ;;  %s399_s15 = scalar_lea.vmem %s251_s12, 512  ;;  %p404_p3 = scmp.lt.s32.totalorder %s251_s12, %s251_s12 }
  0x31   :  { %p400_p2 = scmp.ne.s32.totalorder %s251_s12, %s399_s15  ;;  %p405_p4 = scmp.lt.s32.totalorder %s399_s15, %s399_s15 }
  0x33   :  { %161 = vmatpush1.bf16.msra.mxu0 %v337_v6  ;;  %314 = vmatpush1.bf16.msra.mxu1 %v337_v6  ;;  %p406_p5 = por %p405_p4, %p404_p3 }
  0x34   :  { %162 = vmatprep.subr.bf16.mxu0 %v338_v7  ;;  %307 = vmatprep.subr.bf16.mxu1 %v338_v7 }
  0x35   :  { %p407_p6 = pnand %p406_p5, %p400_p2 }
  0x37   :  { %163 = vmatpush1.bf16.msra.mxu0 %v340_v8  ;;  %315 = vmatpush1.bf16.msra.mxu1 %v340_v8 }
  0x38   :  { %164 = vmatprep.subr.bf16.mxu0 %v341_v9  ;;  %308 = vmatprep.subr.bf16.mxu1 %v341_v9 }
  0x3b   :  { %165 = vmatpush1.bf16.msra.mxu0 %v343_v10  ;;  %316 = vmatpush1.bf16.msra.mxu1 %v343_v10 }
  0x3c   :  { %166 = vmatprep.subr.bf16.mxu0 %v344_v11  ;;  %309 = vmatprep.subr.bf16.mxu1 %v344_v11 }
  0x3f   :  { %167 = vmatpush1.bf16.msra.mxu0 %v346_v12  ;;  %317 = vmatpush1.bf16.msra.mxu1 %v346_v12 }
  0x40   :  { %168 = vmatprep.subr.bf16.mxu0 %v347_v13  ;;  %310 = vmatprep.subr.bf16.mxu1 %v347_v13 }
  0x43   :  { %169 = vmatpush1.bf16.msra.mxu0 %v349_v14  ;;  %318 = vmatpush1.bf16.msra.mxu1 %v349_v14 }
  0x44   :  { %170 = vmatprep.subr.bf16.mxu0 %v350_v15  ;;  %311 = vmatprep.subr.bf16.mxu1 %v350_v15 }
  0x47   :  { %171 = vmatpush1.bf16.msra.mxu0 %v352_v16  ;;  %319 = vmatpush1.bf16.msra.mxu1 %v352_v16 }
  0x4a   :  { %189 = vmatmul.mubr.bf16.vlgmr.msra.gmra.mrb[0].mxu0 %v353_v17  ;;  %199 = vmatmul.mubr.bf16.vlgmr.msra.gmra.mrb[0].mxu1 %v354_v18 }
 0x11d   :  { %v190_v19 = vpop.f32.mrb[0].mxu0  ;;  %v200_v20 = vpop.f32.mrb[0].mxu1 }
 0x11e   :  { %v192_v21 = vpop.f32.mrb[1].mxu0  ;;  %v202_v22 = vpop.f32.mrb[1].mxu1 }
 0x11f   :  { %229 = vst [vmem:[#allocation8] sm:$0xff] %v192_v21  ;;  %231 = vst [vmem:[#allocation8 + $0x10] sm:$0xff] %v202_v22  ;;  %v194_v23 = vpop.f32.mrb[2].mxu0  ;;  %v204_v24 = vpop.f32.mrb[2].mxu1 }
 0x120   :  { %v296_v25 = vpack.c.bf16 %v194_v23, %v190_v19  ;;  %v301_v26 = vpack.c.bf16 %v204_v24, %v200_v20  ;;  %v196_v27 = vpop.f32.mrb[3].mxu0  ;;  %v206_v28 = vpop.f32.mrb[3].mxu1 }
 0x121   :  { %230 = vst [vmem:[#allocation8 + $0x8] sm:$0xff] %v196_v27  ;;  %232 = vst [vmem:[#allocation8 + $0x18] sm:$0xff] %v206_v28 }
 0x122   :  { %297 = vst [vmem:[#allocation7] sm:$0xff] %v296_v25   ;;  %303 = vst [vmem:[#allocation7 + $0x8] sm:$0xff] %v301_v26  }
 0x123   :  { %410 = shalt.err (!%p407_p6)
}
 0x124   :  { %s411_s18 = scalar_lea.hbm %s550_s3, 512 }
 0x125   :  { %p412_p7 = scmp.ne.s32.totalorder %s550_s3, %s411_s18  ;;  %p415_p8 = scmp.lt.u32.totalorder %s411_s18, %s550_s3 }
 0x127   :  { %p417_p9 = pnand %p415_p8, %p412_p7 }
 0x129   :  { %420 = shalt.err (!%p417_p9)
}
 0x12a   :  { %256 = dma.vmem_to_hbm [thread:$0]  %s251_s12, 512, %s550_s3, [#allocation9], %s455_s0, %s455_s0, %s456_s9  }
 0x12b   :  { %s421_s27 = scalar_lea.vmem %s510_s14, 256  ;;  %p426_p11 = scmp.lt.s32.totalorder %s510_s14, %s510_s14 }
 0x12c   :  { %p422_p10 = scmp.ne.s32.totalorder %s510_s14, %s421_s27  ;;  %p427_p12 = scmp.lt.s32.totalorder %s421_s27, %s421_s27 }
 0x12e   :  { %p428_p13 = por %p427_p12, %p426_p11 }
 0x130   :  { %p429_p0 = pnand %p428_p13, %p422_p10 }
 0x132   :  { %432 = shalt.err (!%p429_p0)
}
 0x133   :  { %s433_s30 = scalar_lea.hbm %s549_s2, 256 }
 0x134   :  { %p434_p1 = scmp.ne.s32.totalorder %s549_s2, %s433_s30  ;;  %p437_p2 = scmp.lt.u32.totalorder %s433_s30, %s549_s2 }
 0x136   :  { %p439_p3 = pnand %p437_p2, %p434_p1 }
 0x138   :  { %442 = shalt.err (!%p439_p3)
}
 0x139   :  { %244 = dma.vmem_to_hbm [thread:$0]  %s510_s14, 256, %s549_s2, [#allocation4], %s452_s22, %s452_s22, %s453_s23  }
 0x13a   :  { %447 = dma.done.wait [#allocation4], 256  }
 0x13b   :  { %448 = vsyncadd [#allocation4], 4294967040 }
 0x13c   :  { %449 = dma.done.wait [#allocation9], 512  }
 0x13d   :  { %450 = vsyncadd [#allocation9], 4294966784 }
 0x13e   :  { %263 = vsyncpa [#allocation3], 1 }
 0x13f   :  { %264 = vsyncpa [#allocation6], 1 }
 0x140   :  { %265 = vsyncpa [#allocation4], 1 }
 0x141   :  { %266 = vsyncpa [#allocation9], 1 }

</bundles_post_ra>
